<compile_context>
chip_gen: v6e
topology: v6e:2x2x1
jax: 0.10.0
libtpu: 0.0.40
codegen_flags: <defaults>
</compile_context>

<pallas_src>
import functools

import jax
import jax.numpy as jnp
from jax import lax
from jax.experimental import pallas as pl
from jax.experimental.pallas import tpu as pltpu


def _round_up(x, m):
    return (x + m - 1) // m * m


def prepare_contrastive_head_params(w1, b1, gamma, beta, w2, b2):
    """Pad + cast parameters once (hoisted out of the per-call forward path).

    Linear weights are stored pre-transposed as (in, out) so the kernel computes
    plain x @ W on the MXU.  b1/gamma/beta/b2 may be (H,) or (1, H).
    """
    H = w1.shape[0]
    Hp = _round_up(max(H, 128), 128)
    f32, bf16 = jnp.float32, jnp.bfloat16

    def pad_mat(w):
        return jnp.pad(jnp.asarray(w, f32), ((0, Hp - H), (0, Hp - H))).astype(bf16)

    def pad_vec(v):
        return jnp.pad(jnp.asarray(v, f32).reshape(1, H), ((0, 0), (0, Hp - H)))

    return dict(
        w1=pad_mat(w1), b1=pad_vec(b1),
        gamma=pad_vec(gamma), beta=pad_vec(beta),
        w2=pad_mat(w2), b2=pad_vec(b2),
        H=H, Hp=Hp,
    )


def _contrastive_head_kernel(x_ref, w1_ref, b1_ref, g_ref, beta_ref, w2_ref,
                             b2_ref, o_ref, *, inv_h, approximate_gelu):
    f32, bf16 = jnp.float32, jnp.bfloat16

    # ---- Linear 1 (MXU: bf16 operands, f32 accumulation) ----
    h = jnp.dot(x_ref[...].astype(bf16), w1_ref[...], preferred_element_type=f32)
    h = h + b1_ref[...]

    # ---- GELU ----
    if approximate_gelu:
        # tanh approximation -> EUP slot instead of a long erf VALU polynomial
        # (v6e/v7x win).  ~1e-3 deviation from exact-erf UNITER GELU.
        c = 0.7978845608028654  # sqrt(2/pi)
        h = 0.5 * h * (1.0 + jnp.tanh(c * (h + 0.044715 * h * h * h)))
    else:
        # exact erf GELU == UNITER's GELU class.
        h = 0.5 * h * (1.0 + lax.erf(h * 0.7071067811865476))

    # ---- LayerNorm over the real hidden dim, eps=1e-12 (f32) ----
    # Single fused pass: padded columns of h are exactly zero, so sums over the
    # padded width equal sums over the real width.  (E[x^2]-E[x]^2 form with a
    # clamp at 0; with bf16 matmul operands the matmul rounding dominates the
    # cancellation error of this form.)
    s1 = jnp.sum(h, axis=-1, keepdims=True)
    s2 = jnp.sum(h * h, axis=-1, keepdims=True)
    mean = s1 * inv_h
    var = jnp.maximum(s2 * inv_h - mean * mean, 0.0)
    h = (h - mean) * lax.rsqrt(var + 1e-12)
    h = h * g_ref[...] + beta_ref[...]        # padded gamma/beta = 0 -> pad stays 0

    # ---- Linear 2 (MXU: bf16 operands, f32 accumulation) ----
    y = jnp.dot(h.astype(bf16), w2_ref[...], preferred_element_type=f32)
    y = y + b2_ref[...]

    # ---- F.normalize(dim=1): y / max(||y||, 1e-12) == y * rsqrt(max(||y||^2, 1e-24))
    ss = jnp.sum(y * y, axis=-1, keepdims=True)
    y = y * lax.rsqrt(jnp.maximum(ss, 1e-24))

    o_ref[...] = y.astype(o_ref.dtype)


def contrastive_head(x, params, *, tb_max=512, approximate_gelu=False):
    """Fused ContrastiveHead forward.  x: (B, H); params from
    prepare_contrastive_head_params."""
    B, H = x.shape
    assert H == params["H"], "hidden size mismatch with prepared params"
    Hp = params["Hp"]
    out_dtype = x.dtype

    # ---- batch tiling: rebalance instead of padding a nearly empty last tile.
    n_steps = pl.cdiv(B, tb_max)
    if n_steps == 1 and B >= 16:
        # Split so both v7x TensorCores get real rows (negligible cost on the
        # single-TC v5e/v6e); never force a fully padded second tile for tiny B.
        n_steps = 2
    tb = _round_up(pl.cdiv(B, n_steps), 8)
    n_steps = pl.cdiv(B, tb)
    Bp = n_steps * tb

    # Pad only (no wrapper-side dtype cast; the kernel casts to bf16 itself).
    xp = x if (Bp == B and Hp == H) else jnp.pad(x, ((0, Bp - B), (0, Hp - H)))

    inv_h = 1.0 / float(H)          # statistics over the *real* hidden width

    row_spec = pl.BlockSpec((tb, Hp), lambda i: (i, 0))
    # Constant index_map => DMA'd once; single-buffer to halve resident VMEM.
    mat_spec = pl.BlockSpec((Hp, Hp), lambda i: (0, 0), pipeline_mode=pl.Buffered(1))
    vec_spec = pl.BlockSpec((1, Hp), lambda i: (0, 0), pipeline_mode=pl.Buffered(1))

    # ---- VMEM budget: real per-step footprint + headroom, per-generation cap.
    x_isize = jnp.dtype(x.dtype).itemsize
    o_isize = jnp.dtype(out_dtype).itemsize
    need = (2 * tb * Hp * x_isize            # x tile, double-buffered
            + 2 * tb * Hp * o_isize          # out tile, double-buffered
            + 2 * Hp * Hp * 2                # w1 + w2, bf16, single-buffered
            + 4 * Hp * 4                     # 4 f32 row vectors, single-buffered
            + 2 * tb * Hp * 4)               # f32 temporaries (h, y)
    try:
        vmem_cap = pltpu.get_tpu_info().vmem_capacity_bytes
    except Exception:
        vmem_cap = 64 << 20                  # conservative (v7x per-TC VMEM)
    vmem_limit = int(max(min(int(need * 1.5), int(vmem_cap * 0.8)), 16 << 20))
    # NOTE: for Hp >= ~4096 the resident weights alone exceed v7x's 64 MiB VMEM;
    # a contraction-tiled variant (grid axis over K + f32 accumulator) would be
    # needed there.  Typical UNITER hidden sizes (768/1024) fit comfortably.

    kernel = functools.partial(_contrastive_head_kernel,
                               inv_h=inv_h, approximate_gelu=approximate_gelu)

    out = pl.pallas_call(
        kernel,
        out_shape=jax.ShapeDtypeStruct((Bp, Hp), out_dtype),
        grid_spec=pltpu.PrefetchScalarGridSpec(
            num_scalar_prefetch=0,
            grid=(n_steps,),
            in_specs=[row_spec, mat_spec, vec_spec, vec_spec, vec_spec,
                      mat_spec, vec_spec],
            out_specs=row_spec,
        ),
        compiler_params=pltpu.CompilerParams(
            dimension_semantics=("parallel",),
            vmem_limit_bytes=vmem_limit),
    )(xp, params["w1"], params["b1"], params["gamma"], params["beta"],
      params["w2"], params["b2"])

    return out[:B, :H]


def reference_matched(x, w1, b1, gamma, beta, w2, b2):
    """Pure-JAX model of the kernel's exact arithmetic (bf16 MXU operands,
    f32 accumulation / statistics)."""
    xb = x.astype(jnp.bfloat16)
    w1b = w1.astype(jnp.bfloat16)
    w2b = w2.astype(jnp.bfloat16)
    h = jnp.dot(xb, w1b, preferred_element_type=jnp.float32) + b1
    h = 0.5 * h * (1.0 + lax.erf(h * 0.7071067811865476))
    mean = jnp.mean(h, axis=-1, keepdims=True)
    var = jnp.maximum(jnp.mean(h * h, axis=-1, keepdims=True) - mean * mean, 0.0)
    h = (h - mean) * lax.rsqrt(var + 1e-12)
    h = h * gamma + beta
    y = jnp.dot(h.astype(jnp.bfloat16), w2b, preferred_element_type=jnp.float32) + b2
    ss = jnp.sum(y * y, axis=-1, keepdims=True)
    return y * lax.rsqrt(jnp.maximum(ss, 1e-24))


def reference_f32(x, w1, b1, gamma, beta, w2, b2):
    """Full-f32 PyTorch semantics (Linear -> GELU -> LayerNorm -> Linear -> normalize)."""
    h = x @ w1 + b1
    h = 0.5 * h * (1.0 + lax.erf(h / jnp.sqrt(2.0)))
    mean = jnp.mean(h, axis=-1, keepdims=True)
    var = jnp.mean(jnp.square(h - mean), axis=-1, keepdims=True)
    h = (h - mean) / jnp.sqrt(var + 1e-12)
    h = h * gamma + beta
    y = h @ w2 + b2
    n = jnp.sqrt(jnp.sum(y * y, axis=-1, keepdims=True))
    return y / jnp.maximum(n, 1e-12)


if __name__ == "__main__":
    B, H = 8, 32  # batch, hidden_size (small demo shapes)

    key = jax.random.PRNGKey(0)
    kx, kw1, kb1, kw2, kb2 = jax.random.split(key, 5)

    x = jax.random.normal(kx, (B, H), dtype=jnp.float32)

    # Deterministic synthetic parameters (Linear weights stored as (in, out)).
    w1 = jax.random.normal(kw1, (H, H), dtype=jnp.float32) * 0.02
    b1 = jax.random.normal(kb1, (1, H), dtype=jnp.float32) * 0.02
    gamma = jnp.ones((1, H), dtype=jnp.float32)   # LayerNorm weight
    beta = jnp.zeros((1, H), dtype=jnp.float32)   # LayerNorm bias
    w2 = jax.random.normal(kw2, (H, H), dtype=jnp.float32) * 0.02
    b2 = jax.random.normal(kb2, (1, H), dtype=jnp.float32) * 0.02

    # Pad/cast weights once (hoisted out of the forward path).
    params = prepare_contrastive_head_params(w1, b1, gamma, beta, w2, b2)

    out = contrastive_head(x, params)
    out = jax.block_until_ready(out)

    # Matched-precision reference (same bf16 matmul operands, f32 elsewhere):
    # tight-ish tolerance; small slack for Mosaic-vs-XLA erf/rounding differences.
    ref_m = reference_matched(x, w1, b1, gamma, beta, w2, b2)
    assert jnp.allclose(out, ref_m, atol=1e-3, rtol=1e-3), \
        "mismatch vs matched-precision reference"

    # Full-f32 PyTorch-semantics reference: loose tolerance covers bf16 rounding.
    ref_f = reference_f32(x, w1, b1, gamma, beta, w2, b2)
    assert jnp.allclose(out, ref_f, atol=5e-2, rtol=5e-2), \
        "mismatch vs f32 reference"

    print("KERNEL_OK")
</pallas_src>

<mosaic_0001>
module attributes {stable_mosaic.version = 11 : i64} {
  func.func @_contrastive_head_kernel(%arg0: i32, %arg1: memref<8x128xf32, #tpu.memory_space<vmem>>, %arg2: memref<128x128xbf16, #tpu.memory_space<vmem>>, %arg3: memref<1x128xf32, #tpu.memory_space<vmem>>, %arg4: memref<1x128xf32, #tpu.memory_space<vmem>>, %arg5: memref<1x128xf32, #tpu.memory_space<vmem>>, %arg6: memref<128x128xbf16, #tpu.memory_space<vmem>>, %arg7: memref<1x128xf32, #tpu.memory_space<vmem>>, %arg8: memref<8x128xf32, #tpu.memory_space<vmem>>) attributes {dimension_semantics = [#tpu.dimension_semantics<parallel>], iteration_bounds = array<i64: 1>, scalar_prefetch = 0 : i64, scratch_operands = 0 : i64, tpu.core_type = #tpu.core_type<tc>, window_params = [{transform_indices = @transform_0, window_bounds = array<i64: 8, 128>}, {pipeline_mode = #tpu.pipeline_mode<synchronous>, transform_indices = @transform_1, window_bounds = array<i64: 128, 128>}, {pipeline_mode = #tpu.pipeline_mode<synchronous>, transform_indices = @transform_2, window_bounds = array<i64: 1, 128>}, {pipeline_mode = #tpu.pipeline_mode<synchronous>, transform_indices = @transform_3, window_bounds = array<i64: 1, 128>}, {pipeline_mode = #tpu.pipeline_mode<synchronous>, transform_indices = @transform_4, window_bounds = array<i64: 1, 128>}, {pipeline_mode = #tpu.pipeline_mode<synchronous>, transform_indices = @transform_5, window_bounds = array<i64: 128, 128>}, {pipeline_mode = #tpu.pipeline_mode<synchronous>, transform_indices = @transform_6, window_bounds = array<i64: 1, 128>}, {transform_indices = @transform_7, window_bounds = array<i64: 8, 128>}]} {
    %c0 = arith.constant 0 : index
    %c0_0 = arith.constant 0 : index
    %0 = vector.load %arg1[%c0, %c0_0] : memref<8x128xf32, #tpu.memory_space<vmem>>, vector<8x128xf32>
    %1 = arith.truncf %0 : vector<8x128xf32> to vector<8x128xbf16>
    %c0_1 = arith.constant 0 : index
    %c0_2 = arith.constant 0 : index
    %2 = vector.load %arg2[%c0_1, %c0_2] : memref<128x128xbf16, #tpu.memory_space<vmem>>, vector<128x128xbf16>
    %cst = arith.constant dense<0.000000e+00> : vector<8x128xf32>
    %3 = tpu.matmul %1, %2, %cst {dimension_numbers = #tpu.dot_dimension_numbers<[1], [0], [0], [1], [0, 0, 1, 1], [], []>} : vector<8x128xbf16>, vector<128x128xbf16>, vector<8x128xf32> -> vector<8x128xf32>
    %c0_3 = arith.constant 0 : index
    %c0_4 = arith.constant 0 : index
    %4 = vector.load %arg3[%c0_3, %c0_4] : memref<1x128xf32, #tpu.memory_space<vmem>>, vector<1x128xf32>
    %5 = vector.broadcast %4 : vector<1x128xf32> to vector<8x128xf32>
    %6 = arith.addf %3, %5 : vector<8x128xf32>
    %cst_5 = arith.constant 5.000000e-01 : f32
    %7 = vector.broadcast %cst_5 : f32 to vector<8x128xf32>
    %8 = arith.mulf %7, %6 : vector<8x128xf32>
    %cst_6 = arith.constant 0.707106769 : f32
    %9 = vector.broadcast %cst_6 : f32 to vector<8x128xf32>
    %10 = arith.mulf %6, %9 : vector<8x128xf32>
    %11 = math.erf %10 : vector<8x128xf32>
    %cst_7 = arith.constant 1.000000e+00 : f32
    %12 = vector.broadcast %cst_7 : f32 to vector<8x128xf32>
    %13 = arith.addf %12, %11 : vector<8x128xf32>
    %14 = arith.mulf %8, %13 : vector<8x128xf32>
    %cst_8 = arith.constant dense<0.000000e+00> : vector<8xf32>
    %15 = vector.multi_reduction <add>, %14, %cst_8 [1] : vector<8x128xf32> to vector<8xf32>
    %16 = vector.shape_cast %15 : vector<8xf32> to vector<8x1xf32>
    %17 = arith.mulf %14, %14 : vector<8x128xf32>
    %cst_9 = arith.constant dense<0.000000e+00> : vector<8xf32>
    %18 = vector.multi_reduction <add>, %17, %cst_9 [1] : vector<8x128xf32> to vector<8xf32>
    %19 = vector.shape_cast %18 : vector<8xf32> to vector<8x1xf32>
    %cst_10 = arith.constant 3.125000e-02 : f32
    %20 = vector.broadcast %cst_10 : f32 to vector<8x1xf32>
    %21 = arith.mulf %16, %20 : vector<8x1xf32>
    %cst_11 = arith.constant 3.125000e-02 : f32
    %22 = vector.broadcast %cst_11 : f32 to vector<8x1xf32>
    %23 = arith.mulf %19, %22 : vector<8x1xf32>
    %24 = arith.mulf %21, %21 : vector<8x1xf32>
    %25 = arith.subf %23, %24 : vector<8x1xf32>
    %cst_12 = arith.constant 0.000000e+00 : f32
    %26 = vector.broadcast %cst_12 : f32 to vector<8x1xf32>
    %27 = arith.maximumf %25, %26 : vector<8x1xf32>
    %28 = vector.broadcast %21 : vector<8x1xf32> to vector<8x128xf32>
    %29 = arith.subf %14, %28 : vector<8x128xf32>
    %cst_13 = arith.constant 9.99999996E-13 : f32
    %30 = vector.broadcast %cst_13 : f32 to vector<8x1xf32>
    %31 = arith.addf %27, %30 : vector<8x1xf32>
    %32 = math.rsqrt %31 : vector<8x1xf32>
    %33 = vector.broadcast %32 : vector<8x1xf32> to vector<8x128xf32>
    %34 = arith.mulf %29, %33 : vector<8x128xf32>
    %c0_14 = arith.constant 0 : index
    %c0_15 = arith.constant 0 : index
    %35 = vector.load %arg4[%c0_14, %c0_15] : memref<1x128xf32, #tpu.memory_space<vmem>>, vector<1x128xf32>
    %36 = vector.broadcast %35 : vector<1x128xf32> to vector<8x128xf32>
    %37 = arith.mulf %34, %36 : vector<8x128xf32>
    %c0_16 = arith.constant 0 : index
    %c0_17 = arith.constant 0 : index
    %38 = vector.load %arg5[%c0_16, %c0_17] : memref<1x128xf32, #tpu.memory_space<vmem>>, vector<1x128xf32>
    %39 = vector.broadcast %38 : vector<1x128xf32> to vector<8x128xf32>
    %40 = arith.addf %37, %39 : vector<8x128xf32>
    %41 = arith.truncf %40 : vector<8x128xf32> to vector<8x128xbf16>
    %c0_18 = arith.constant 0 : index
    %c0_19 = arith.constant 0 : index
    %42 = vector.load %arg6[%c0_18, %c0_19] : memref<128x128xbf16, #tpu.memory_space<vmem>>, vector<128x128xbf16>
    %cst_20 = arith.constant dense<0.000000e+00> : vector<8x128xf32>
    %43 = tpu.matmul %41, %42, %cst_20 {dimension_numbers = #tpu.dot_dimension_numbers<[1], [0], [0], [1], [0, 0, 1, 1], [], []>} : vector<8x128xbf16>, vector<128x128xbf16>, vector<8x128xf32> -> vector<8x128xf32>
    %c0_21 = arith.constant 0 : index
    %c0_22 = arith.constant 0 : index
    %44 = vector.load %arg7[%c0_21, %c0_22] : memref<1x128xf32, #tpu.memory_space<vmem>>, vector<1x128xf32>
    %45 = vector.broadcast %44 : vector<1x128xf32> to vector<8x128xf32>
    %46 = arith.addf %43, %45 : vector<8x128xf32>
    %47 = arith.mulf %46, %46 : vector<8x128xf32>
    %cst_23 = arith.constant dense<0.000000e+00> : vector<8xf32>
    %48 = vector.multi_reduction <add>, %47, %cst_23 [1] : vector<8x128xf32> to vector<8xf32>
    %49 = vector.shape_cast %48 : vector<8xf32> to vector<8x1xf32>
    %cst_24 = arith.constant 1.000000e-24 : f32
    %50 = vector.broadcast %cst_24 : f32 to vector<8x1xf32>
    %51 = arith.maximumf %49, %50 : vector<8x1xf32>
    %52 = math.rsqrt %51 : vector<8x1xf32>
    %53 = vector.broadcast %52 : vector<8x1xf32> to vector<8x128xf32>
    %54 = arith.mulf %46, %53 : vector<8x128xf32>
    %c0_25 = arith.constant 0 : index
    %c0_26 = arith.constant 0 : index
    %55 = vector.load %arg8[%c0_25, %c0_26] : memref<8x128xf32, #tpu.memory_space<vmem>>, vector<8x128xf32>
    tpu.vector_store %arg8[%c0_25, %c0_26], %54 {strides = array<i32>} : memref<8x128xf32, #tpu.memory_space<vmem>>, vector<8x128xf32>,
    return
  }
  func.func @transform_0(%arg0: i32) -> (i32, i32) {
    %c0_i32 = arith.constant 0 : i32
    %c0_i32_0 = arith.constant 0 : i32
    return %arg0, %c0_i32 : i32, i32
  }
  func.func @transform_1(%arg0: i32) -> (i32, i32) {
    %c0_i32 = arith.constant 0 : i32
    %c0_i32_0 = arith.constant 0 : i32
    %c0_i32_1 = arith.constant 0 : i32
    return %c0_i32, %c0_i32_0 : i32, i32
  }
  func.func @transform_2(%arg0: i32) -> (i32, i32) {
    %c0_i32 = arith.constant 0 : i32
    %c0_i32_0 = arith.constant 0 : i32
    %c0_i32_1 = arith.constant 0 : i32
    return %c0_i32, %c0_i32_0 : i32, i32
  }
  func.func @transform_3(%arg0: i32) -> (i32, i32) {
    %c0_i32 = arith.constant 0 : i32
    %c0_i32_0 = arith.constant 0 : i32
    %c0_i32_1 = arith.constant 0 : i32
    return %c0_i32, %c0_i32_0 : i32, i32
  }
  func.func @transform_4(%arg0: i32) -> (i32, i32) {
    %c0_i32 = arith.constant 0 : i32
    %c0_i32_0 = arith.constant 0 : i32
    %c0_i32_1 = arith.constant 0 : i32
    return %c0_i32, %c0_i32_0 : i32, i32
  }
  func.func @transform_5(%arg0: i32) -> (i32, i32) {
    %c0_i32 = arith.constant 0 : i32
    %c0_i32_0 = arith.constant 0 : i32
    %c0_i32_1 = arith.constant 0 : i32
    return %c0_i32, %c0_i32_0 : i32, i32
  }
  func.func @transform_6(%arg0: i32) -> (i32, i32) {
    %c0_i32 = arith.constant 0 : i32
    %c0_i32_0 = arith.constant 0 : i32
    %c0_i32_1 = arith.constant 0 : i32
    return %c0_i32, %c0_i32_0 : i32, i32
  }
  func.func @transform_7(%arg0: i32) -> (i32, i32) {
    %c0_i32 = arith.constant 0 : i32
    %c0_i32_0 = arith.constant 0 : i32
    return %arg0, %c0_i32 : i32, i32
  }
}

</mosaic_0001>

<bundles_post_ra>
// kernel: tpu_custom_call.1
= control target key start
LH: loop header
LB: loop body
LE: loop exit
PB: predicated region body
PF: predicated region fallthrough
CT: control target
= control target key end

     0   :  { %12 = vsyncpa [#allocation3], 0  ;;  %s634_s0 = inlined_call_operand.hbm [shape: f32[8,128], index: 0, kind: input, shape index: {}]   ;;  %s635_s1 = inlined_call_operand.hbm [shape: bf16[128,128], index: 1, kind: input, shape index: {}]   ;;  %s636_s2 = inlined_call_operand.vmem [shape: f32[1,128], index: 2, kind: input, shape index: {}]   ;;  %s637_s3 = inlined_call_operand.vmem [shape: f32[1,128], index: 3, kind: input, shape index: {}]   ;;  %s638_s4 = inlined_call_operand.vmem [shape: f32[1,128], index: 4, kind: input, shape index: {}]   ;;  %s639_s5 = inlined_call_operand.hbm [shape: bf16[128,128], index: 5, kind: input, shape index: {}]   ;;  %s640_s6 = inlined_call_operand.vmem [shape: f32[1,128], index: 6, kind: input, shape index: {}]   ;;  %s641_s7 = inlined_call_operand.hbm [shape: f32[8,128], index: 7, kind: output, shape index: {}]  }
   0x1   :  { %13 = vsyncpa [#allocation6], 0 }
   0x2   :  { %14 = vsyncpa [#allocation4], 0  ;;  %s544_s24 = smov [#allocation5]  }
   0x3   :  { %s30_s25 = sshll.u32 %s544_s24, 4  ;;  %s31_s25 = int_to_ptr.vmem [resolvable:$true] %s30_s25 }
   0x4   :  { %s466_s26 = scalar_lea.vmem %s31_s25, 1024  ;;  %p471_p1 = scmp.lt.s32.totalorder %s31_s25, %s31_s25 }
   0x5   :  { %p467_p0 = scmp.ne.s32.totalorder %s31_s25, %s466_s26  ;;  %p472_p2 = scmp.lt.s32.totalorder %s466_s26, %s466_s26 }
   0x7   :  { %p473_p3 = por %p472_p2, %p471_p1 }
   0x9   :  { %p474_p4 = pnand %p473_p3, %p467_p0 }
   0xb   :  { %477 = shalt.err (!%p474_p4)
}
   0xc   :  { %s545_s27 = smov 64   ;;  %s546_s28 = smov 4  }
   0xd   :  { %36 = dma.hbm_to_vmem [thread:$0]  %s635_s1, 1024, %s31_s25, [#allocation6], %s545_s27, %s545_s27, %s546_s28  }
   0xe   :  { %s547_s8 = smov [#allocation2]   ;;  %s548_s10 = smov [#allocation7]  }
   0xf   :  { %s21_s9 = sshll.u32 %s547_s8, 4  ;;  %s48_s11 = sshll.u32 %s548_s10, 4  ;;  %s22_s9 = int_to_ptr.vmem [resolvable:$true] %s21_s9  ;;  %s49_s11 = int_to_ptr.vmem [resolvable:$true] %s48_s11 }
  0x10   :  { %s486_s12 = scalar_lea.vmem %s22_s9, 128  ;;  %p491_p6 = scmp.lt.s32.totalorder %s22_s9, %s22_s9 }
  0x11   :  { %p487_p5 = scmp.ne.s32.totalorder %s22_s9, %s486_s12  ;;  %p492_p7 = scmp.lt.s32.totalorder %s486_s12, %s486_s12 }
  0x13   :  { %p493_p8 = por %p492_p7, %p491_p6 }
  0x15   :  { %p494_p9 = pnand %p493_p8, %p487_p5 }
  0x17   :  { %497 = shalt.err (!%p494_p9)
}
  0x18   :  { %24 = dma.hbm_to_vmem [thread:$0]  %s634_s0, 128, %s22_s9, [#allocation3]  }
  0x19   :  { %s506_s15 = scalar_lea.vmem %s49_s11, 1024  ;;  %p511_p11 = scmp.lt.s32.totalorder %s49_s11, %s49_s11 }
  0x1a   :  { %p507_p10 = scmp.ne.s32.totalorder %s49_s11, %s506_s15  ;;  %p512_p12 = scmp.lt.s32.totalorder %s506_s15, %s506_s15 }
  0x1c   :  { %p513_p13 = por %p512_p12, %p511_p11 }
  0x1e   :  { %p514_p0 = pnand %p513_p13, %p507_p10 }
  0x20   :  { %517 = shalt.err (!%p514_p0)
}
  0x21   :  { %54 = dma.hbm_to_vmem [thread:$0]  %s639_s5, 1024, %s49_s11, [#allocation6], %s545_s27, %s545_s27, %s546_s28  }
  0x22   :  { %538 = dma.done.wait [#allocation3], 128  }
  0x23   :  { %539 = vsyncadd [#allocation3], 4294967168 }
  0x24   :  { %540 = dma.done.wait [#allocation6], 2048  }
  0x25   :  { %541 = vsyncadd [#allocation6], 4294965248  ;;  %v549_v0 = vmov 0.0   ;;  %vm550_vm0 = vmmov 0   ;;  %v436_v1 = vld [vmem:[#allocation5 + $0x38] sm:$0xff]   ;;  %v437_v2 = vld [vmem:[#allocation5 + $0x30] sm:$0xff]  }
  0x26   :  { %388 = vmatprep.subr.bf16.mxu0 %v549_v0  ;;  %404 = vmatprep.mubr.msk.bf16.mxu0 %vm550_vm0, %v549_v0  ;;  %v438_v3 = vld [vmem:[#allocation5 + $0x28] sm:$0xff]   ;;  %v439_v4 = vld [vmem:[#allocation5 + $0x20] sm:$0xff]   ;;  %v440_v5 = vld [vmem:[#allocation5 + $0x18] sm:$0xff]  }
  0x27   :  { %408 = vmatprep.subr.bf16.mxu1 %v549_v0  ;;  %424 = vmatprep.mubr.msk.bf16.mxu1 %vm550_vm0, %v549_v0  ;;  %v441_v6 = vld [vmem:[#allocation5 + $0x10] sm:$0xff]   ;;  %v442_v7 = vld [vmem:[#allocation5 + $0x8] sm:$0xff]   ;;  %v443_v8 = vld [vmem:[#allocation5] sm:$0xff]  }
  0x28   :  { %389 = vmatpush3.bf16.msra.mxu0 %v436_v1  ;;  %v67_v9 = vld [vmem:[#allocation2] sm:$0xff]  ;;  %v445_v24 = vld [vmem:[#allocation7 + $0x30] sm:$0xff]   ;;  %v446_v25 = vld [vmem:[#allocation7 + $0x28] sm:$0xff]  }
  0x29   :  { %390 = vmatprep.subr.bf16.mxu0 %v549_v0  ;;  %v68_v10 = vpack.c.bf16 %v67_v9, %v67_v9  ;;  %v350_v11 = vld [vmem:[%s636_s2] ss:$0 sm:$0xff]  ;;  %v447_v26 = vld [vmem:[#allocation7 + $0x20] sm:$0xff]   ;;  %v449_v28 = vld [vmem:[#allocation7 + $0x10] sm:$0xff]  }
  0x2a   :  { %v444_v23 = vld [vmem:[#allocation7 + $0x38] sm:$0xff]   ;;  %v450_v29 = vld [vmem:[#allocation7 + $0x8] sm:$0xff]   ;;  %v451_v30 = vld [vmem:[#allocation7] sm:$0xff]  }
  0x2b   :  { %409 = vmatpush3.bf16.msra.mxu1 %v444_v23  ;;  %v448_v27 = vld [vmem:[#allocation7 + $0x18] sm:$0xff]  }
  0x2c   :  { %391 = vmatpush3.bf16.msra.mxu0 %v437_v2  ;;  %410 = vmatprep.subr.bf16.mxu1 %v549_v0  ;;  %v359_v41 = vld [vmem:[%s637_s3] ss:$0 sm:$0xff]  ;;  %s551_s3 = smov [#allocation8]  }
  0x2d   :  { %392 = vmatprep.subr.bf16.mxu0 %v549_v0  ;;  %v360_v43 = vld [vmem:[%s638_s4] ss:$0 sm:$0xff]  ;;  %s340_s4 = sshll.u32 %s551_s3, 4  ;;  %s341_s4 = int_to_ptr.vmem [resolvable:$true] %s340_s4 }
  0x2e   :  { %v361_v47 = vld [vmem:[%s640_s6] ss:$0 sm:$0xff]  ;;  %s518_s22 = scalar_lea.vmem %s341_s4, 128  ;;  %p523_p2 = scmp.lt.s32.totalorder %s341_s4, %s341_s4 }
  0x2f   :  { %411 = vmatpush3.bf16.msra.mxu1 %v445_v24  ;;  %p519_p1 = scmp.ne.s32.totalorder %s341_s4, %s518_s22  ;;  %p524_p3 = scmp.lt.s32.totalorder %s518_s22, %s518_s22 }
  0x30   :  { %393 = vmatpush3.bf16.msra.mxu0 %v438_v3  ;;  %412 = vmatprep.subr.bf16.mxu1 %v549_v0 }
  0x31   :  { %394 = vmatprep.subr.bf16.mxu0 %v549_v0  ;;  %p525_p4 = por %p524_p3, %p523_p2 }
  0x33   :  { %413 = vmatpush3.bf16.msra.mxu1 %v446_v25  ;;  %p526_p5 = pnand %p525_p4, %p519_p1 }
  0x34   :  { %395 = vmatpush3.bf16.msra.mxu0 %v439_v4  ;;  %414 = vmatprep.subr.bf16.mxu1 %v549_v0 }
  0x35   :  { %396 = vmatprep.subr.bf16.mxu0 %v549_v0 }
  0x37   :  { %415 = vmatpush3.bf16.msra.mxu1 %v447_v26 }
  0x38   :  { %397 = vmatpush3.bf16.msra.mxu0 %v440_v5  ;;  %416 = vmatprep.subr.bf16.mxu1 %v549_v0 }
  0x39   :  { %398 = vmatprep.subr.bf16.mxu0 %v549_v0 }
  0x3b   :  { %417 = vmatpush3.bf16.msra.mxu1 %v448_v27 }
  0x3c   :  { %399 = vmatpush3.bf16.msra.mxu0 %v441_v6  ;;  %418 = vmatprep.subr.bf16.mxu1 %v549_v0 }
  0x3d   :  { %400 = vmatprep.subr.bf16.mxu0 %v549_v0 }
  0x3f   :  { %419 = vmatpush3.bf16.msra.mxu1 %v449_v28 }
  0x40   :  { %401 = vmatpush3.bf16.msra.mxu0 %v442_v7  ;;  %420 = vmatprep.subr.bf16.mxu1 %v549_v0 }
  0x41   :  { %402 = vmatprep.subr.bf16.mxu0 %v549_v0 }
  0x43   :  { %421 = vmatpush3.bf16.msra.mxu1 %v450_v29 }
  0x44   :  { %403 = vmatpush3.bf16.msra.mxu0 %v443_v8  ;;  %422 = vmatprep.subr.bf16.mxu1 %v549_v0 }
  0x47   :  { %405 = vmatmul.mubr.bf16.vlgmr.msra.gmra.mxu0 %v68_v10  ;;  %423 = vmatpush3.bf16.msra.mxu1 %v451_v30 }
 0x107   :  { %v174_v12 = vpop.f32.mrf.mxu0 }
 0x108   :  { %v175_v13 = vadd.f32 %v350_v11, %v174_v12 }
 0x109   :  { %v406_v14 = vpop.f32.mrf.mxu0 }
 0x10a   :  { %v181_v15 = vmul.f32 0.70710677, %v175_v13  ;;  %v180_v19 = vmul.f32 0.5, %v175_v13 }
 0x10b   :  { %v177_v16 = vpop.f32.mrf.mxu0 }
 0x10c   :  { %452 = verf.f32 %v181_v15 }
 0x10d   :  { %v407_v17 = vpop.f32.mrf.mxu0 }
 0x119   :  { %v453_v18 = vpop.eup %452 }
 0x11a   :  { %v183_v20 = vadd.f32 1.0, %v453_v18 }
 0x11c   :  { %v184_v21 = vmul.f32 %v183_v20, %v180_v19 }
 0x11e   :  { %185 = vadd.xlane.f32.xlu0 %v184_v21  ;;  %v187_v22 = vmul.f32 %v184_v21, %v184_v21 }
 0x122   :  { %188 = vadd.xlane.f32.xlu0 %v187_v22 }
 0x1a7   :  { %v186_v31 = vpop.xlane.xlu0 %185 }
 0x1a8   :  { %v190_v32 = vmul.f32 0.03125, %v186_v31 }
 0x1aa   :  { %v192_v34 = vmul.f32 %v190_v32, %v190_v32  ;;  %v195_v39 = vsub.f32 %v184_v21, %v190_v32 }
 0x1ab   :  { %v189_v33 = vpop.xlane.xlu0 %188 }
 0x1ac   :  { %v191_v35 = vmul.f32 0.03125, %v189_v33 }
 0x1ae   :  { %v193_v36 = vsub.f32 %v191_v35, %v192_v34 }
 0x1b0   :  { %v194_v37 = vmax.f32 %v193_v36, 0.0 }
 0x1b2   :  { %v196_v38 = vadd.f32 1e-12, %v194_v37 }
 0x1b4   :  { %454 = vrsqrt.f32 %v196_v38 }
 0x1c1   :  { %v455_v40 = vpop.eup %454 }
 0x1c2   :  { %v198_v42 = vmul.f32 %v455_v40, %v195_v39 }
 0x1c4   :  { %v206_v44 = vmul.f32 %v359_v41, %v198_v42 }
 0x1c6   :  { %v214_v45 = vadd.f32 %v360_v43, %v206_v44 }
 0x1c8   :  { %v215_v46 = vpack.c.bf16 %v214_v45, %v214_v45 }
 0x1ca   :  { %425 = vmatmul.mubr.bf16.vlgmr.msra.gmra.mxu1 %v215_v46 }
 0x28a   :  { %v321_v48 = vpop.f32.mrf.mxu1 }
 0x28b   :  { %v322_v49 = vadd.f32 %v361_v47, %v321_v48 }
 0x28c   :  { %v426_v50 = vpop.f32.mrf.mxu1 }
 0x28d   :  { %v327_v51 = vmul.f32 %v322_v49, %v322_v49 }
 0x28e   :  { %v324_v52 = vpop.f32.mrf.mxu1 }
 0x28f   :  { %328 = vadd.xlane.f32.xlu1 %v327_v51 }
 0x290   :  { %v427_v53 = vpop.f32.mrf.mxu1 }
 0x318   :  { %v329_v54 = vpop.xlane.xlu1 %328 }
 0x319   :  { %v330_v55 = vmax.f32 %v329_v54, 1e-24 }
 0x31b   :  { %456 = vrsqrt.f32 %v330_v55 }
 0x328   :  { %v457_v56 = vpop.eup %456 }
 0x329   :  { %v332_v57 = vmul.f32 %v457_v56, %v322_v49 }
 0x32b   :  { %333 = vst [vmem:[#allocation8] sm:$0xff] %v332_v57 }
 0x32c   :  { %529 = shalt.err (!%p526_p5)
}
 0x32d   :  { %343 = dma.vmem_to_hbm [thread:$0]  %s341_s4, 128, %s641_s7, [#allocation4]  }
 0x32e   :  { %542 = dma.done.wait [#allocation4], 128  }
 0x32f   :  { %543 = vsyncadd [#allocation4], 4294967168 }
 0x330   :  { %347 = vsyncpa [#allocation3], 1 }
 0x331   :  { %348 = vsyncpa [#allocation6], 1 }
 0x332   :  { %349 = vsyncpa [#allocation4], 1 }

</bundles_post_ra>
